<compile_context>
chip_gen: v6e
topology: v6e:2x2x1
jax: 0.10.0
libtpu: 0.0.40
codegen_flags: <defaults>
</compile_context>

<pallas_src>
import jax
import jax.numpy as jnp
from jax.experimental import pallas as pl
from jax.experimental.pallas import tpu as pltpu

B, H, W, C_IN = 2, 16, 16, 4   # batch of patches
KH, KW, F_DIM = 3, 3, 32       # conv kernel / feature dim
N_CLASSES = 1                  # binary MIL head

K = KH * KW * C_IN             # 36  (im2col contraction dim)
K_PAD = 40                     # padded to a multiple of 8 (row 36 carries the bias "ones")
L = B * H * W                  # 512 (lane axis, multiple of 128)
HW = H * W


def mil_kernel(p_ref, wt_ref, wl_ref, pool_ref, bl_ref, o_ref):
    # p_ref   : (K_PAD, L)        im2col patches, transposed; row K is all-ones (bias)
    # wt_ref  : (F_DIM, K_PAD)    conv weight transposed; column K is the conv bias
    # wl_ref  : (F_DIM, 1)        classifier weight (lane-broadcast column)
    # pool_ref: (L, B)            per-bag averaging matrix (1/HW entries)
    # bl_ref  : (1, 1)            classifier bias
    # o_ref   : (1, B)            sigmoid probabilities (one lane per bag)

    # Conv (with folded bias) as a single MXU matmul, long axis on lanes.
    acc = jnp.dot(wt_ref[...], p_ref[...],
                  preferred_element_type=jnp.float32)          # (F, L)
    acc = jnp.maximum(acc, 0.0)                                # ReLU (VPU)

    # Classifier weight applied per location on the VPU (linear head commutes
    # with the mean pool), then per-bag average pool via one small matmul.
    weighted = acc * wl_ref[...]                               # (F, L)
    feat_w = jnp.dot(weighted, pool_ref[...],
                     preferred_element_type=jnp.float32)       # (F, B)
    logits = jnp.sum(feat_w, axis=0, keepdims=True) + bl_ref[...]   # (1, B)
    o_ref[...] = jax.nn.sigmoid(logits)


def mil_forward(x_nhwc, w_conv, b_conv, w_lin, b_lin):
    # ---- glue (plain JAX): zero-pad + im2col + layout massaging ----
    x_pad = jnp.pad(x_nhwc, ((0, 0), (1, 1), (1, 1), (0, 0)))
    cols = [x_pad[:, kh:kh + H, kw:kw + W, :]
            for kh in range(KH) for kw in range(KW)]
    patches = jnp.concatenate(cols, axis=-1).reshape(L, K)     # (B*H*W, 36)

    # Transpose so L sits on lanes; pad K 36->40; fold conv bias via ones row.
    patches_t = jnp.zeros((K_PAD, L), jnp.float32)
    patches_t = patches_t.at[:K, :].set(patches.T)
    patches_t = patches_t.at[K, :].set(1.0)

    w_flat = w_conv.reshape(K, F_DIM)                          # (36, 32), (kh,kw,c) order
    wt = jnp.zeros((F_DIM, K_PAD), jnp.float32)
    wt = wt.at[:, :K].set(w_flat.T)
    wt = wt.at[:, K].set(b_conv.reshape(F_DIM))

    pool = jnp.repeat(jnp.eye(B, dtype=jnp.float32), HW, axis=0) / HW   # (L, B)

    out = pl.pallas_call(
        mil_kernel,
        out_shape=jax.ShapeDtypeStruct((1, B), jnp.float32),
        grid_spec=pltpu.PrefetchScalarGridSpec(
            num_scalar_prefetch=0,
            grid=(1,),   # single step: all bags processed at once
            in_specs=[
                pl.BlockSpec((K_PAD, L), lambda i: (0, 0)),
                pl.BlockSpec((F_DIM, K_PAD), lambda i: (0, 0)),
                pl.BlockSpec((F_DIM, N_CLASSES), lambda i: (0, 0)),
                pl.BlockSpec((L, B), lambda i: (0, 0)),
                pl.BlockSpec((1, N_CLASSES), lambda i: (0, 0)),
            ],
            out_specs=pl.BlockSpec((1, B), lambda i: (0, 0)),
        ),
        compiler_params=pltpu.CompilerParams(
            dimension_semantics=("arbitrary",)),
    )(patches_t, wt, w_lin, pool, b_lin)

    return out.T                                               # (B, 1) probabilities


if __name__ == "__main__":
    key = jax.random.PRNGKey(0)
    kx, kwc, kbc, kwl, kbl = jax.random.split(key, 5)

    # Deterministic synthetic parameters (shapes implied by the module components).
    x = jax.random.normal(kx, (B, H, W, C_IN), jnp.float32)          # patches (NHWC)
    w_conv = 0.1 * jax.random.normal(kwc, (KH, KW, C_IN, F_DIM), jnp.float32)
    b_conv = 0.1 * jax.random.normal(kbc, (1, F_DIM), jnp.float32)
    w_lin = 0.1 * jax.random.normal(kwl, (F_DIM, N_CLASSES), jnp.float32)
    b_lin = 0.1 * jax.random.normal(kbl, (1, N_CLASSES), jnp.float32)

    probs = mil_forward(x, w_conv, b_conv, w_lin, b_lin)
    jax.block_until_ready(probs)

    # Pure-JAX reference for sanity (same semantics as the PyTorch forward).
    ref_conv = jax.lax.conv_general_dilated(
        x, w_conv, window_strides=(1, 1), padding="SAME",
        dimension_numbers=("NHWC", "HWIO", "NHWC")) + b_conv[0]
    ref_feat = jnp.mean(jnp.maximum(ref_conv, 0.0), axis=(1, 2))
    ref = jax.nn.sigmoid(ref_feat @ w_lin + b_lin)
    assert probs.shape == (B, N_CLASSES)
    assert jnp.allclose(probs, ref, atol=1e-4, rtol=1e-4)

    # TODO(synk): train_step/val_step (Adam + BCE backward) are optimizer logic, not
    # forward-pass compute, and are intentionally not implemented as kernels.
    print("KERNEL_OK")
</pallas_src>

<mosaic_0001>
module attributes {stable_mosaic.version = 11 : i64} {
  func.func @mil_kernel(%arg0: i32, %arg1: memref<40x512xf32, #tpu.memory_space<vmem>>, %arg2: memref<32x40xf32, #tpu.memory_space<vmem>>, %arg3: memref<32x1xf32, #tpu.memory_space<vmem>>, %arg4: memref<512x2xf32, #tpu.memory_space<vmem>>, %arg5: memref<1x1xf32, #tpu.memory_space<vmem>>, %arg6: memref<1x2xf32, #tpu.memory_space<vmem>>) attributes {dimension_semantics = [#tpu.dimension_semantics<arbitrary>], iteration_bounds = array<i64: 1>, scalar_prefetch = 0 : i64, scratch_operands = 0 : i64, tpu.core_type = #tpu.core_type<tc>, window_params = [{pipeline_mode = #tpu.pipeline_mode<synchronous>, transform_indices = @transform_0, window_bounds = array<i64: 40, 512>}, {pipeline_mode = #tpu.pipeline_mode<synchronous>, transform_indices = @transform_1, window_bounds = array<i64: 32, 40>}, {pipeline_mode = #tpu.pipeline_mode<synchronous>, transform_indices = @transform_2, window_bounds = array<i64: 32, 1>}, {pipeline_mode = #tpu.pipeline_mode<synchronous>, transform_indices = @transform_3, window_bounds = array<i64: 512, 2>}, {pipeline_mode = #tpu.pipeline_mode<synchronous>, transform_indices = @transform_4, window_bounds = array<i64: 1, 1>}, {pipeline_mode = #tpu.pipeline_mode<synchronous>, transform_indices = @transform_5, window_bounds = array<i64: 1, 2>}]} {
    %c0 = arith.constant 0 : index
    %c0_0 = arith.constant 0 : index
    %0 = vector.load %arg2[%c0, %c0_0] : memref<32x40xf32, #tpu.memory_space<vmem>>, vector<32x40xf32>
    %c0_1 = arith.constant 0 : index
    %c0_2 = arith.constant 0 : index
    %1 = vector.load %arg1[%c0_1, %c0_2] : memref<40x512xf32, #tpu.memory_space<vmem>>, vector<40x512xf32>
    %cst = arith.constant dense<0.000000e+00> : vector<32x512xf32>
    %2 = tpu.matmul %0, %1, %cst {dimension_numbers = #tpu.dot_dimension_numbers<[1], [0], [0], [1], [0, 0, 1, 1], [], []>} : vector<32x40xf32>, vector<40x512xf32>, vector<32x512xf32> -> vector<32x512xf32>
    %cst_3 = arith.constant 0.000000e+00 : f32
    %3 = vector.broadcast %cst_3 : f32 to vector<32x512xf32>
    %4 = arith.maximumf %2, %3 : vector<32x512xf32>
    %c0_4 = arith.constant 0 : index
    %c0_5 = arith.constant 0 : index
    %5 = vector.load %arg3[%c0_4, %c0_5] : memref<32x1xf32, #tpu.memory_space<vmem>>, vector<32x1xf32>
    %6 = vector.broadcast %5 : vector<32x1xf32> to vector<32x512xf32>
    %7 = arith.mulf %4, %6 : vector<32x512xf32>
    %c0_6 = arith.constant 0 : index
    %c0_7 = arith.constant 0 : index
    %8 = vector.load %arg4[%c0_6, %c0_7] : memref<512x2xf32, #tpu.memory_space<vmem>>, vector<512x2xf32>
    %cst_8 = arith.constant dense<0.000000e+00> : vector<32x2xf32>
    %9 = tpu.matmul %7, %8, %cst_8 {dimension_numbers = #tpu.dot_dimension_numbers<[1], [0], [0], [1], [0, 0, 1, 1], [], []>} : vector<32x512xf32>, vector<512x2xf32>, vector<32x2xf32> -> vector<32x2xf32>
    %cst_9 = arith.constant dense<0.000000e+00> : vector<2xf32>
    %10 = vector.multi_reduction <add>, %9, %cst_9 [0] : vector<32x2xf32> to vector<2xf32>
    %11 = vector.shape_cast %10 : vector<2xf32> to vector<1x2xf32>
    %c0_10 = arith.constant 0 : index
    %c0_11 = arith.constant 0 : index
    %12 = vector.load %arg5[%c0_10, %c0_11] : memref<1x1xf32, #tpu.memory_space<vmem>>, vector<1x1xf32>
    %13 = vector.broadcast %12 : vector<1x1xf32> to vector<1x2xf32>
    %14 = arith.addf %11, %13 : vector<1x2xf32>
    %15 = arith.negf %14 : vector<1x2xf32>
    %16 = math.exp %15 : vector<1x2xf32>
    %cst_12 = arith.constant 1.000000e+00 : f32
    %17 = vector.broadcast %cst_12 : f32 to vector<1x2xf32>
    %18 = arith.addf %17, %16 : vector<1x2xf32>
    %19 = arith.divf %17, %18 : vector<1x2xf32>
    %c0_13 = arith.constant 0 : index
    %c0_14 = arith.constant 0 : index
    %20 = vector.load %arg6[%c0_13, %c0_14] : memref<1x2xf32, #tpu.memory_space<vmem>>, vector<1x2xf32>
    tpu.vector_store %arg6[%c0_13, %c0_14], %19 {strides = array<i32>} : memref<1x2xf32, #tpu.memory_space<vmem>>, vector<1x2xf32>,
    return
  }
  func.func @transform_0(%arg0: i32) -> (i32, i32) {
    %c0_i32 = arith.constant 0 : i32
    %c0_i32_0 = arith.constant 0 : i32
    %c0_i32_1 = arith.constant 0 : i32
    return %c0_i32, %c0_i32_0 : i32, i32
  }
  func.func @transform_1(%arg0: i32) -> (i32, i32) {
    %c0_i32 = arith.constant 0 : i32
    %c0_i32_0 = arith.constant 0 : i32
    %c0_i32_1 = arith.constant 0 : i32
    return %c0_i32, %c0_i32_0 : i32, i32
  }
  func.func @transform_2(%arg0: i32) -> (i32, i32) {
    %c0_i32 = arith.constant 0 : i32
    %c0_i32_0 = arith.constant 0 : i32
    %c0_i32_1 = arith.constant 0 : i32
    return %c0_i32, %c0_i32_0 : i32, i32
  }
  func.func @transform_3(%arg0: i32) -> (i32, i32) {
    %c0_i32 = arith.constant 0 : i32
    %c0_i32_0 = arith.constant 0 : i32
    %c0_i32_1 = arith.constant 0 : i32
    return %c0_i32, %c0_i32_0 : i32, i32
  }
  func.func @transform_4(%arg0: i32) -> (i32, i32) {
    %c0_i32 = arith.constant 0 : i32
    %c0_i32_0 = arith.constant 0 : i32
    %c0_i32_1 = arith.constant 0 : i32
    return %c0_i32, %c0_i32_0 : i32, i32
  }
  func.func @transform_5(%arg0: i32) -> (i32, i32) {
    %c0_i32 = arith.constant 0 : i32
    %c0_i32_0 = arith.constant 0 : i32
    %c0_i32_1 = arith.constant 0 : i32
    return %c0_i32, %c0_i32_0 : i32, i32
  }
}

</mosaic_0001>

<bundles_post_ra>
// kernel: tpu_custom_call.1
= control target key start
LH: loop header
LB: loop body
LE: loop exit
PB: predicated region body
PF: predicated region fallthrough
CT: control target
= control target key end

     0   :  { %s1026_s0 = inlined_call_operand.vmem [shape: f32[40,512], index: 0, kind: input, shape index: {}]   ;;  %s1027_s1 = inlined_call_operand.vmem [shape: f32[32,40], index: 1, kind: input, shape index: {}]   ;;  %s1028_s2 = inlined_call_operand.vmem [shape: f32[32,1], index: 2, kind: input, shape index: {}]   ;;  %s1029_s3 = inlined_call_operand.vmem [shape: f32[512,2], index: 3, kind: input, shape index: {}]   ;;  %s1030_s4 = inlined_call_operand.<no memory space> [shape: f32[1,1], index: 4, kind: input, shape index: {}]   ;;  %s1031_s5 = inlined_call_operand.hbm [shape: f32[1,2], index: 5, kind: output, shape index: {}]  }
   0x1   :  { %v10_v0 = vstv %s1030_s4 }
   0x2   :  { %11 = vst [vmem:[#allocation2] sm:$0x1] %v10_v0 }
   0x3   :  { %v44_v1 = vld [vmem:[%s1026_s0 + $0x88] sm:$0xff]  ;;  %v46_v2 = vld [vmem:[%s1026_s0 + $0x98] sm:$0xff]  ;;  %v43_v3 = vld [vmem:[%s1026_s0 + $0x80] sm:$0xff]  ;;  %vm47_vm0 = vcmask 326656   ;;  %v703_v22 = vmov 0.0   ;;  %v704_v26 = vmov 0  }
   0x4   :  { %82 = vmatprep.subr.mxu0 %v44_v1  ;;  %171 = vmatprep.subr.mxu1 %v46_v2  ;;  %v45_v4 = vld [vmem:[%s1026_s0 + $0x90] sm:$0xff]  ;;  %v40_v5 = vld [vmem:[%s1026_s0 + $0x68] sm:$0xff]  ;;  %v42_v6 = vld [vmem:[%s1026_s0 + $0x78] sm:$0xff] }
   0x5   :  { %83 = vmatpush1.msra.mxu0 %v43_v3  ;;  %172 = vmatpush1.msra.mxu1 %v45_v4  ;;  %v39_v7 = vld [vmem:[%s1026_s0 + $0x60] sm:$0xff]  ;;  %v41_v8 = vld [vmem:[%s1026_s0 + $0x70] sm:$0xff]  ;;  %v36_v9 = vld [vmem:[%s1026_s0 + $0x48] sm:$0xff] }
   0x6   :  { %84 = vmatprep.subr.mxu0 %v40_v5  ;;  %173 = vmatprep.subr.mxu1 %v42_v6  ;;  %v38_v10 = vld [vmem:[%s1026_s0 + $0x58] sm:$0xff]  ;;  %v35_v11 = vld [vmem:[%s1026_s0 + $0x40] sm:$0xff]  ;;  %v37_v12 = vld [vmem:[%s1026_s0 + $0x50] sm:$0xff] }
   0x7   :  { %85 = vmatpush1.msra.mxu0 %v39_v7  ;;  %174 = vmatpush1.msra.mxu1 %v41_v8  ;;  %v32_v13 = vld [vmem:[%s1026_s0 + $0x28] sm:$0xff]  ;;  %v34_v14 = vld [vmem:[%s1026_s0 + $0x38] sm:$0xff]  ;;  %v31_v15 = vld [vmem:[%s1026_s0 + $0x20] sm:$0xff] }
   0x8   :  { %86 = vmatprep.subr.mxu0 %v36_v9  ;;  %175 = vmatprep.subr.mxu1 %v38_v10  ;;  %v33_v16 = vld [vmem:[%s1026_s0 + $0x30] sm:$0xff]  ;;  %v28_v17 = vld [vmem:[%s1026_s0 + $0x8] sm:$0xff]  ;;  %v30_v18 = vld [vmem:[%s1026_s0 + $0x18] sm:$0xff] }
   0x9   :  { %87 = vmatpush1.msra.mxu0 %v35_v11  ;;  %176 = vmatpush1.msra.mxu1 %v37_v12  ;;  %v27_v19 = vld [vmem:[%s1026_s0] sm:$0xff]  ;;  %v29_v20 = vld [vmem:[%s1026_s0 + $0x10] sm:$0xff]  ;;  %v24_v25 = vld [vmem:[%s1027_s1 + $0x8] sm:$0xff] }
   0xa   :  { %88 = vmatprep.subr.mxu0 %v32_v13  ;;  %177 = vmatprep.subr.mxu1 %v34_v14  ;;  %v23_v21 = vld [vmem:[%s1027_s1] sm:$0xff]  ;;  %v256_v24 = vld [vmem:[%s1028_s2 + $0x10] sm:$0xff]  ;;  %v325_v27 = vld [vmem:[%s1029_s3 + $0xf8] sm:$0xff] }
   0xb   :  { %89 = vmatpush1.msra.mxu0 %v31_v15  ;;  %178 = vmatpush1.msra.mxu1 %v33_v16  ;;  %v254_v23 = vld [vmem:[%s1028_s2] sm:$0xff]  ;;  %v357_v28 = vld [vmem:[%s1029_s3 + $0x1f8] sm:$0xff]  ;;  %v255_v29 = vld [vmem:[%s1028_s2 + $0x8] sm:$0xff] }
   0xc   :  { %90 = vmatprep.subr.mxu0 %v28_v17  ;;  %179 = vmatprep.subr.mxu1 %v30_v18  ;;  %v257_v30 = vld [vmem:[%s1028_s2 + $0x18] sm:$0xff]  ;;  %v25_v31 = vld [vmem:[%s1027_s1 + $0x10] sm:$0xff]  ;;  %v542_v34 = vld [vmem:[#allocation2] sm:$0x1] }
   0xd   :  { %91 = vmatpush1.msra.mxu0 %v27_v19  ;;  %124 = vmatprep.mubr.f32.mxu0 %v703_v22  ;;  %v309_v32 = vld [vmem:[%s1029_s3 + $0x78] sm:$0xff]  ;;  %v324_v35 = vld [vmem:[%s1029_s3 + $0xf0] sm:$0xff]  ;;  %v323_v40 = vld [vmem:[%s1029_s3 + $0xe8] sm:$0xff] }
   0xe   :  { %180 = vmatpush1.msra.mxu1 %v29_v20  ;;  %213 = vmatprep.mubr.f32.mxu1 %v703_v22  ;;  %v341_v33 = vld [vmem:[%s1029_s3 + $0x178] sm:$0xff]  ;;  %v356_v37 = vld [vmem:[%s1029_s3 + $0x1f0] sm:$0xff]  ;;  %v355_v41 = vld [vmem:[%s1029_s3 + $0x1e8] sm:$0xff] }
   0xf   :  { %575 = vmatmul.mubr.msk.f32.vlgmr.msra.gmra.mxu0 %vm47_vm0, %v23_v21  ;;  %579 = vmatmul.mubr.msk.f32.vlgmr.msra.gmra.mxu1 %vm47_vm0, %v23_v21  ;;  %v26_v36 = vld [vmem:[%s1027_s1 + $0x18] sm:$0xff]  ;;  %v308_v38 = vld [vmem:[%s1029_s3 + $0x70] sm:$0xff]  ;;  %v307_v42 = vld [vmem:[%s1029_s3 + $0x68] sm:$0xff] }
  0x10   :  { %130 = vmatprep.mubr.f32.mxu0 %v703_v22  ;;  %219 = vmatprep.mubr.f32.mxu1 %v703_v22  ;;  %v340_v39 = vld [vmem:[%s1029_s3 + $0x170] sm:$0xff]  ;;  %v339_v43 = vld [vmem:[%s1029_s3 + $0x168] sm:$0xff]  ;;  %v322_v44 = vld [vmem:[%s1029_s3 + $0xe0] sm:$0xff] }
  0x11   :  { %675 = vset.pattern.permute.xlu0 %v704_v26  ;;  %676 = vset.pattern.permute.xlu1 %v704_v26 }
  0x12   :  { %260 = vperm.xlu0 %675, %v254_v23   ;;  %270 = vperm.xlu1 %676, %v256_v24  }
  0x13   :  { %576 = vmatmul.mubr.msk.f32.gmra.mxu0 %vm47_vm0, %v24_v25  ;;  %580 = vmatmul.mubr.msk.f32.gmra.mxu1 %vm47_vm0, %v24_v25 }
  0x14   :  { %136 = vmatprep.mubr.f32.mxu0 %v703_v22  ;;  %225 = vmatprep.mubr.f32.mxu1 %v703_v22 }
  0x15   :  { %584 = vmatprep.subr.mxu0 %v325_v27  ;;  %628 = vmatprep.subr.mxu1 %v357_v28 }
  0x16   :  { %265 = vperm.xlu0 %675, %v255_v29   ;;  %275 = vperm.xlu1 %676, %v257_v30  }
  0x17   :  { %577 = vmatmul.mubr.msk.f32.gmra.mxu0 %vm47_vm0, %v25_v31  ;;  %581 = vmatmul.mubr.msk.f32.gmra.mxu1 %vm47_vm0, %v25_v31 }
  0x18   :  { %142 = vmatprep.mubr.f32.mxu0 %v703_v22  ;;  %231 = vmatprep.mubr.f32.mxu1 %v703_v22 }
  0x19   :  { %585 = vmatpush3.msra.mxu0 %v309_v32  ;;  %629 = vmatpush3.msra.mxu1 %v341_v33 }
  0x1a   :  { %545 = vperm.xlu0 %675, %v542_v34   ;;  %586 = vmatprep.subr.mxu0 %v324_v35 }
  0x1b   :  { %578 = vmatmul.mubr.msk.f32.gmra.mxu0 %vm47_vm0, %v26_v36  ;;  %582 = vmatmul.mubr.msk.f32.gmra.mxu1 %vm47_vm0, %v26_v36 }
  0x1c   :  { %630 = vmatprep.subr.mxu1 %v356_v37  ;;  %587 = vmatpush3.msra.mxu0 %v308_v38 }
  0x1d   :  { %12 = vsyncpa [#allocation4], 0  ;;  %631 = vmatpush3.msra.mxu1 %v340_v39  ;;  %588 = vmatprep.subr.mxu0 %v323_v40  ;;  %v354_v45 = vld [vmem:[%s1029_s3 + $0x1e0] sm:$0xff]  ;;  %v321_v48 = vld [vmem:[%s1029_s3 + $0xd8] sm:$0xff]  ;;  %vm528_vm1 = vcmask 15360   ;;  %vm559_vm2 = vcmask 8192  }
  0x1e   :  { %v306_v46 = vld [vmem:[%s1029_s3 + $0x60] sm:$0xff]  ;;  %632 = vmatprep.subr.mxu1 %v355_v41  ;;  %589 = vmatpush3.msra.mxu0 %v307_v42  ;;  %v353_v49 = vld [vmem:[%s1029_s3 + $0x1d8] sm:$0xff]  ;;  %v320_v52 = vld [vmem:[%s1029_s3 + $0xd0] sm:$0xff] }
  0x1f   :  { %v338_v47 = vld [vmem:[%s1029_s3 + $0x160] sm:$0xff]  ;;  %633 = vmatpush3.msra.mxu1 %v339_v43  ;;  %590 = vmatprep.subr.mxu0 %v322_v44  ;;  %v305_v50 = vld [vmem:[%s1029_s3 + $0x58] sm:$0xff]  ;;  %v352_v53 = vld [vmem:[%s1029_s3 + $0x1d0] sm:$0xff] }
  0x20   :  { %634 = vmatprep.subr.mxu1 %v354_v45  ;;  %591 = vmatpush3.msra.mxu0 %v306_v46  ;;  %v337_v51 = vld [vmem:[%s1029_s3 + $0x158] sm:$0xff]  ;;  %v304_v54 = vld [vmem:[%s1029_s3 + $0x50] sm:$0xff]  ;;  %v319_v56 = vld [vmem:[%s1029_s3 + $0xc8] sm:$0xff] }
  0x21   :  { %635 = vmatpush3.msra.mxu1 %v338_v47  ;;  %592 = vmatprep.subr.mxu0 %v321_v48  ;;  %v336_v55 = vld [vmem:[%s1029_s3 + $0x150] sm:$0xff]  ;;  %v351_v57 = vld [vmem:[%s1029_s3 + $0x1c8] sm:$0xff]  ;;  %v318_v60 = vld [vmem:[%s1029_s3 + $0xc0] sm:$0xff] }
  0x22   :  { %636 = vmatprep.subr.mxu1 %v353_v49  ;;  %593 = vmatpush3.msra.mxu0 %v305_v50  ;;  %v303_v58 = vld [vmem:[%s1029_s3 + $0x48] sm:$0xff]  ;;  %v350_v61 = vld [vmem:[%s1029_s3 + $0x1c0] sm:$0xff]  ;;  %v317_v0 = vld [vmem:[%s1029_s3 + $0xb8] sm:$0xff] }
  0x23   :  { %637 = vmatpush3.msra.mxu1 %v337_v51  ;;  %594 = vmatprep.subr.mxu0 %v320_v52  ;;  %v335_v59 = vld [vmem:[%s1029_s3 + $0x148] sm:$0xff]  ;;  %v302_v62 = vld [vmem:[%s1029_s3 + $0x40] sm:$0xff]  ;;  %v349_v1 = vld [vmem:[%s1029_s3 + $0x1b8] sm:$0xff] }
  0x24   :  { %638 = vmatprep.subr.mxu1 %v352_v53  ;;  %595 = vmatpush3.msra.mxu0 %v304_v54  ;;  %v334_v63 = vld [vmem:[%s1029_s3 + $0x140] sm:$0xff]  ;;  %v301_v2 = vld [vmem:[%s1029_s3 + $0x38] sm:$0xff]  ;;  %v316_v4 = vld [vmem:[%s1029_s3 + $0xb0] sm:$0xff] }
  0x25   :  { %639 = vmatpush3.msra.mxu1 %v336_v55  ;;  %596 = vmatprep.subr.mxu0 %v319_v56  ;;  %v333_v3 = vld [vmem:[%s1029_s3 + $0x138] sm:$0xff]  ;;  %v348_v5 = vld [vmem:[%s1029_s3 + $0x1b0] sm:$0xff]  ;;  %v315_v8 = vld [vmem:[%s1029_s3 + $0xa8] sm:$0xff] }
  0x26   :  { %640 = vmatprep.subr.mxu1 %v351_v57  ;;  %597 = vmatpush3.msra.mxu0 %v303_v58  ;;  %v300_v6 = vld [vmem:[%s1029_s3 + $0x30] sm:$0xff]  ;;  %v347_v9 = vld [vmem:[%s1029_s3 + $0x1a8] sm:$0xff]  ;;  %v314_v12 = vld [vmem:[%s1029_s3 + $0xa0] sm:$0xff] }
  0x27   :  { %641 = vmatpush3.msra.mxu1 %v335_v59  ;;  %598 = vmatprep.subr.mxu0 %v318_v60  ;;  %v332_v7 = vld [vmem:[%s1029_s3 + $0x130] sm:$0xff]  ;;  %v299_v10 = vld [vmem:[%s1029_s3 + $0x28] sm:$0xff]  ;;  %v346_v13 = vld [vmem:[%s1029_s3 + $0x1a0] sm:$0xff] }
  0x28   :  { %642 = vmatprep.subr.mxu1 %v350_v61  ;;  %599 = vmatpush3.msra.mxu0 %v302_v62  ;;  %v331_v11 = vld [vmem:[%s1029_s3 + $0x128] sm:$0xff]  ;;  %v298_v14 = vld [vmem:[%s1029_s3 + $0x20] sm:$0xff]  ;;  %v313_v16 = vld [vmem:[%s1029_s3 + $0x98] sm:$0xff] }
  0x29   :  { %643 = vmatpush3.msra.mxu1 %v334_v63  ;;  %600 = vmatprep.subr.mxu0 %v317_v0  ;;  %v330_v15 = vld [vmem:[%s1029_s3 + $0x120] sm:$0xff]  ;;  %v345_v17 = vld [vmem:[%s1029_s3 + $0x198] sm:$0xff]  ;;  %v312_v20 = vld [vmem:[%s1029_s3 + $0x90] sm:$0xff] }
  0x2a   :  { %644 = vmatprep.subr.mxu1 %v349_v1  ;;  %601 = vmatpush3.msra.mxu0 %v301_v2  ;;  %v297_v18 = vld [vmem:[%s1029_s3 + $0x18] sm:$0xff]  ;;  %v344_v21 = vld [vmem:[%s1029_s3 + $0x190] sm:$0xff]  ;;  %v311_v24 = vld [vmem:[%s1029_s3 + $0x88] sm:$0xff] }
  0x2b   :  { %645 = vmatpush3.msra.mxu1 %v333_v3  ;;  %602 = vmatprep.subr.mxu0 %v316_v4  ;;  %v329_v19 = vld [vmem:[%s1029_s3 + $0x118] sm:$0xff]  ;;  %v296_v22 = vld [vmem:[%s1029_s3 + $0x10] sm:$0xff]  ;;  %v343_v25 = vld [vmem:[%s1029_s3 + $0x188] sm:$0xff] }
  0x2c   :  { %646 = vmatprep.subr.mxu1 %v348_v5  ;;  %603 = vmatpush3.msra.mxu0 %v300_v6  ;;  %v328_v23 = vld [vmem:[%s1029_s3 + $0x110] sm:$0xff]  ;;  %v295_v26 = vld [vmem:[%s1029_s3 + $0x8] sm:$0xff]  ;;  %v310_v28 = vld [vmem:[%s1029_s3 + $0x80] sm:$0xff] }
  0x2d   :  { %647 = vmatpush3.msra.mxu1 %v332_v7  ;;  %604 = vmatprep.subr.mxu0 %v315_v8  ;;  %v327_v27 = vld [vmem:[%s1029_s3 + $0x108] sm:$0xff]  ;;  %v342_v29 = vld [vmem:[%s1029_s3 + $0x180] sm:$0xff] }
  0x2e   :  { %648 = vmatprep.subr.mxu1 %v347_v9  ;;  %605 = vmatpush3.msra.mxu0 %v299_v10  ;;  %v294_v30 = vld [vmem:[%s1029_s3] sm:$0xff] }
  0x2f   :  { %649 = vmatpush3.msra.mxu1 %v331_v11  ;;  %606 = vmatprep.subr.mxu0 %v314_v12  ;;  %v326_v31 = vld [vmem:[%s1029_s3 + $0x100] sm:$0xff]  ;;  %s705_s3 = smov [#allocation3]  }
  0x30   :  { %650 = vmatprep.subr.mxu1 %v346_v13  ;;  %607 = vmatpush3.msra.mxu0 %v298_v14  ;;  %s567_s8 = sshll.u32 %s705_s3, 4  ;;  %s568_s8 = int_to_ptr.vmem [resolvable:$true] %s567_s8 }
  0x31   :  { %651 = vmatpush3.msra.mxu1 %v330_v15  ;;  %608 = vmatprep.subr.mxu0 %v313_v16  ;;  %s681_s9 = scalar_lea.vmem %s568_s8, 16  ;;  %s685_s10 = scalar_lea.vmem %s568_s8, 32 }
  0x32   :  { %652 = vmatprep.subr.mxu1 %v345_v17  ;;  %609 = vmatpush3.msra.mxu0 %v297_v18  ;;  %p682_p0 = scmp.ne.s32.totalorder %s568_s8, %s681_s9  ;;  %p686_p1 = scmp.lt.s32.totalorder %s568_s8, %s568_s8 }
  0x33   :  { %653 = vmatpush3.msra.mxu1 %v329_v19  ;;  %610 = vmatprep.subr.mxu0 %v312_v20  ;;  %p687_p2 = scmp.lt.s32.totalorder %s685_s10, %s681_s9 }
  0x34   :  { %654 = vmatprep.subr.mxu1 %v344_v21  ;;  %611 = vmatpush3.msra.mxu0 %v296_v22 }
  0x35   :  { %655 = vmatpush3.msra.mxu1 %v328_v23  ;;  %612 = vmatprep.subr.mxu0 %v311_v24  ;;  %p688_p3 = por %p687_p2, %p686_p1 }
  0x36   :  { %656 = vmatprep.subr.mxu1 %v343_v25  ;;  %613 = vmatpush3.msra.mxu0 %v295_v26 }
  0x37   :  { %657 = vmatpush3.msra.mxu1 %v327_v27  ;;  %614 = vmatprep.subr.mxu0 %v310_v28  ;;  %p689_p4 = pnand %p688_p3, %p682_p0 }
  0x38   :  { %658 = vmatprep.subr.mxu1 %v342_v29  ;;  %615 = vmatpush3.msra.mxu0 %v294_v30 }
  0x39   :  { %659 = vmatpush3.msra.mxu1 %v326_v31 }
  0x8d   :  { %v261_v34 = vpop.permute.xlu0 %260  ;;  %v271_v58 = vpop.permute.xlu1 %270 }
  0x91   :  { %v266_v51 = vpop.permute.xlu0 %265  ;;  %v276_v15 = vpop.permute.xlu1 %275 }
  0xcf   :  { %v126_v32 = vpop.f32.mrf.mxu0  ;;  %v215_v33 = vpop.f32.mrf.mxu1 }
  0xd0   :  { %v238_v35 = vmax.f32 %v126_v32, 0.0  ;;  %v240_v36 = vmax.f32 %v215_v33, 0.0 }
  0xd1   :  { %v128_v37 = vpop.f32.mrf.mxu0  ;;  %v217_v38 = vpop.f32.mrf.mxu1 }
  0xd2   :  { %v239_v39 = vmax.f32 %v128_v37, 0.0  ;;  %v241_v40 = vmax.f32 %v217_v38, 0.0  ;;  %v278_v45 = vmul.f32 %v261_v34, %v238_v35  ;;  %v280_v46 = vmul.f32 %v261_v34, %v240_v36 }
  0xd3   :  { %v132_v41 = vpop.f32.mrf.mxu0  ;;  %v221_v42 = vpop.f32.mrf.mxu1 }
  0xd4   :  { %v279_v43 = vmul.f32 %v261_v34, %v239_v39  ;;  %v281_v44 = vmul.f32 %v261_v34, %v241_v40  ;;  %v242_v47 = vmax.f32 %v132_v41, 0.0  ;;  %v244_v48 = vmax.f32 %v221_v42, 0.0 }
  0xd5   :  { %v134_v49 = vpop.f32.mrf.mxu0  ;;  %v223_v50 = vpop.f32.mrf.mxu1 }
  0xd6   :  { %v243_v52 = vmax.f32 %v134_v49, 0.0  ;;  %v245_v53 = vmax.f32 %v223_v50, 0.0  ;;  %422 = vmatprep.mubr.f32.mxu0 %v279_v43  ;;  %507 = vmatprep.mubr.f32.mxu1 %v281_v44  ;;  %v282_v59 = vmul.f32 %v266_v51, %v242_v47  ;;  %v284_v60 = vmul.f32 %v266_v51, %v244_v48 }
  0xd7   :  { %v138_v54 = vpop.f32.mrf.mxu0  ;;  %v227_v55 = vpop.f32.mrf.mxu1  ;;  %423 = vmatmul.mubr.f32.vlgmr.msra.gmra.mxu0 %v278_v45  ;;  %508 = vmatmul.mubr.f32.vlgmr.msra.gmra.mxu1 %v280_v46 }
  0xd8   :  { %v283_v56 = vmul.f32 %v266_v51, %v243_v52  ;;  %v285_v57 = vmul.f32 %v266_v51, %v245_v53  ;;  %v246_v61 = vmax.f32 %v138_v54, 0.0  ;;  %v248_v62 = vmax.f32 %v227_v55, 0.0 }
  0xd9   :  { %v140_v63 = vpop.f32.mrf.mxu0  ;;  %v229_v0 = vpop.f32.mrf.mxu1  ;;  %v548_v54 = vlaneseq }
  0xda   :  { %v247_v1 = vmax.f32 %v140_v63, 0.0  ;;  %v249_v2 = vmax.f32 %v229_v0, 0.0  ;;  %427 = vmatprep.mubr.f32.mxu0 %v283_v56  ;;  %512 = vmatprep.mubr.f32.mxu1 %v285_v57  ;;  %v286_v7 = vmul.f32 %v271_v58, %v246_v61  ;;  %v288_v8 = vmul.f32 %v271_v58, %v248_v62  ;;  %v546_v62 = vpop.permute.xlu0 %545 }
  0xdb   :  { %v144_v3 = vpop.f32.mrf.mxu0  ;;  %v233_v4 = vpop.f32.mrf.mxu1  ;;  %428 = vmatmul.mubr.f32.gmra.mxu0 %v282_v59  ;;  %513 = vmatmul.mubr.f32.gmra.mxu1 %v284_v60  ;;  %v549_v57 = vshrl.u32 %v548_v54, 7 }
  0xdc   :  { %v287_v5 = vmul.f32 %v271_v58, %v247_v1  ;;  %v289_v6 = vmul.f32 %v271_v58, %v249_v2  ;;  %v250_v9 = vmax.f32 %v144_v3, 0.0  ;;  %v252_v10 = vmax.f32 %v233_v4, 0.0 }
  0xdd   :  { %v146_v11 = vpop.f32.mrf.mxu0  ;;  %v235_v12 = vpop.f32.mrf.mxu1  ;;  %v550_v60 = vsub.s32 0, %v549_v57 }
  0xde   :  { %v251_v13 = vmax.f32 %v146_v11, 0.0  ;;  %v253_v14 = vmax.f32 %v235_v12, 0.0  ;;  %432 = vmatprep.mubr.f32.mxu0 %v287_v5  ;;  %517 = vmatprep.mubr.f32.mxu1 %v289_v6  ;;  %v290_v18 = vmul.f32 %v276_v15, %v250_v9  ;;  %v292_v19 = vmul.f32 %v276_v15, %v252_v10 }
  0xdf   :  { %433 = vmatmul.mubr.f32.gmra.mxu0 %v286_v7  ;;  %518 = vmatmul.mubr.f32.gmra.mxu1 %v288_v8  ;;  %v551_v0 = vrot.slane %v546_v62, %v550_v60 }
  0xe0   :  { %v291_v16 = vmul.f32 %v276_v15, %v251_v13  ;;  %v293_v17 = vmul.f32 %v276_v15, %v253_v14 }
  0xe2   :  { %437 = vmatprep.mubr.f32.mxu0 %v291_v16  ;;  %522 = vmatprep.mubr.f32.mxu1 %v293_v17 }
  0xe3   :  { %438 = vmatmul.mubr.f32.gmra.mxu0 %v290_v18  ;;  %523 = vmatmul.mubr.f32.gmra.mxu1 %v292_v19 }
 0x197   :  { %v616_v20 = vpop.f32.mrf.mxu0  ;;  %v660_v21 = vpop.f32.mrf.mxu1 }
 0x199   :  { %v617_v22 = vpop.f32.mrf.mxu0  ;;  %v661_v23 = vpop.f32.mrf.mxu1 }
 0x19a   :  { %v618_v28 = vadd.f32 %v617_v22, %v616_v20  ;;  %v662_v29 = vadd.f32 %v661_v23, %v660_v21 }
 0x19b   :  { %v619_v24 = vpop.f32.mrf.mxu0  ;;  %v663_v25 = vpop.f32.mrf.mxu1 }
 0x19c   :  { %v510_v37 = vadd.f32 %v662_v29, %v618_v28 }
 0x19d   :  { %v620_v26 = vpop.f32.mrf.mxu0  ;;  %v664_v27 = vpop.f32.mrf.mxu1 }
 0x19e   :  { %v621_v30 = vadd.f32 %v620_v26, %v619_v24  ;;  %v665_v31 = vadd.f32 %v664_v27, %v663_v25  ;;  %v529_v46 = vsel %vm528_vm1, %v510_v37, 0.0 }
 0x19f   :  { %v622_v32 = vpop.f32.mrf.mxu0  ;;  %v666_v33 = vpop.f32.mrf.mxu1 }
 0x1a0   :  { %v515_v34 = vadd.f32 %v665_v31, %v621_v30 }
 0x1a1   :  { %v623_v35 = vpop.f32.mrf.mxu0  ;;  %v667_v36 = vpop.f32.mrf.mxu1 }
 0x1a2   :  { %v624_v38 = vadd.f32 %v623_v35, %v622_v32  ;;  %v668_v39 = vadd.f32 %v667_v36, %v666_v33  ;;  %v530_v42 = vsel %vm528_vm1, %v515_v34, 0.0 }
 0x1a3   :  { %v625_v40 = vpop.f32.mrf.mxu0  ;;  %v669_v41 = vpop.f32.mrf.mxu1  ;;  %v531_v50 = vadd.f32 %v530_v42, %v529_v46 }
 0x1a4   :  { %v520_v43 = vadd.f32 %v668_v39, %v624_v38 }
 0x1a5   :  { %v626_v44 = vpop.f32.mrf.mxu0  ;;  %v670_v45 = vpop.f32.mrf.mxu1 }
 0x1a6   :  { %v532_v47 = vsel %vm528_vm1, %v520_v43, 0.0  ;;  %v627_v48 = vadd.f32 %v626_v44, %v625_v40  ;;  %v671_v49 = vadd.f32 %v670_v45, %v669_v41 }
 0x1a7   :  { %v533_v52 = vadd.f32 %v532_v47, %v531_v50 }
 0x1a8   :  { %v525_v51 = vadd.f32 %v671_v49, %v627_v48 }
 0x1aa   :  { %v534_v53 = vsel %vm528_vm1, %v525_v51, 0.0 }
 0x1ab   :  { %v535_v55 = vadd.f32 %v534_v53, %v533_v52 }
 0x1ad   :  { %v536_v56 = vrot.slane %v535_v55, 4 }
 0x1af   :  { %v537_v58 = vadd.f32 %v536_v56, %v535_v55 }
 0x1b1   :  { %v538_v59 = vrot.slane %v537_v58, 2 }
 0x1b3   :  { %v539_v61 = vadd.f32 %v538_v59, %v537_v58 }
 0x1b5   :  { %v540_v63 = vrot.slane %v539_v61, 1 }
 0x1b7   :  { %v541_v1 = vadd.f32 %v540_v63, %v539_v61 }
 0x1b9   :  { %v552_v2 = vadd.f32 %v551_v0, %v541_v1 }
 0x1bb   :  { %v583_v3 = vmul.f32 -1.442695, %v552_v2 }
 0x1bd   :  { %677 = vpow2.f32 %v583_v3 }
 0x1ca   :  { %v678_v4 = vpop.eup %677 }
 0x1cb   :  { %v556_v5 = vadd.f32 1.0, %v678_v4 }
 0x1cd   :  { %679 = vrcp.f32 %v556_v5 }
 0x1da   :  { %v680_v6 = vpop.eup %679 }
 0x1db   :  { %560 = vst.msk [vmem:[#allocation3] sm:$0x1] %vm559_vm2, %v680_v6 }
 0x1dc   :  { %692 = shalt.err (!%p689_p4)
}
 0x1dd   :  { %570 = dma.vmem_to_hbm [thread:$0]  %s568_s8, 16, %s1031_s5, [#allocation4]  }
 0x1de   :  { %701 = dma.done.wait [#allocation4], 16  }
 0x1df   :  { %702 = vsyncadd [#allocation4], 4294967280 }
 0x1e0   :  { %574 = vsyncpa [#allocation4], 1 }

</bundles_post_ra>
